<compile_context>
chip_gen: v6e
topology: v6e:2x2x1
jax: 0.10.0
libtpu: 0.0.40
codegen_flags: <defaults>
</compile_context>

<pallas_src>
import jax
import jax.numpy as jnp
from jax.experimental import pallas as pl
from jax.experimental.pallas import tpu as pltpu


# ----------------------------------------------------------------------------
# Kernel: one fused forward step over a (TB, num_inputs) batch tile.
#   x_ref  : (TB, ni)                 bf16 activations
#   l1_ref : (ni + 1, 2*H)            bf16; rows [0:ni] = [w1c | w1a], row ni = [b1c | b1a]
#   l2_ref : (2*H + 1, 1 + num_out)   f32;  rows [0:2H] = blockdiag(w2c, w2a), row 2H = [b2c | b2a]
#   out_ref: (TB, 1 + num_out)        f32;  column 0 = value, columns 1.. = mu
# ----------------------------------------------------------------------------
def actor_critic_kernel(x_ref, l1_ref, l2_ref, out_ref):
    x = x_ref[...]                            # (TB, ni) bf16
    ni = x.shape[1]
    h2 = l2_ref.shape[0] - 1                  # 2 * hidden_size (static)

    # Fused first layer (critic || actor): bf16 operands, f32 MXU accumulation.
    w1 = l1_ref[:ni, :]                       # (ni, 2H) static slice (no runtime cost)
    b1 = l1_ref[ni:ni + 1, :].astype(jnp.float32)
    h = jnp.dot(x, w1, preferred_element_type=jnp.float32) + b1
    h = jnp.maximum(h, 0.0)                   # f32 ReLU on VPU; h = [hc | ha]

    # Fused second layer via block-diagonal weights: one (tiny) f32 matmul.
    w2 = l2_ref[:h2, :]                       # (2H, 1+no) f32
    b2 = l2_ref[h2:h2 + 1, :]                 # (1, 1+no)  f32
    out_ref[...] = jnp.dot(h, w2, preferred_element_type=jnp.float32) + b2


# ----------------------------------------------------------------------------
# Parameter packing — call ONCE at init / parameter-update time, not per step.
# ----------------------------------------------------------------------------
def pack_params(params, *, activation_dtype=jnp.bfloat16):
    H = params["w1a"].shape[1]
    no = params["w2a"].shape[1]

    # Layer-1 slab: (ni+1, 2H) = [[w1c | w1a], [b1c | b1a]]  (bf16: streamed-dtype match)
    w1 = jnp.concatenate([params["w1c"], params["w1a"]], axis=1)
    b1 = jnp.concatenate([params["b1c"], params["b1a"]], axis=1)
    l1 = jnp.concatenate([w1, b1], axis=0).astype(activation_dtype)

    # Layer-2 slab: (2H+1, 1+no) = [[blockdiag(w2c, w2a)], [b2c | b2a]]  (kept f32)
    w2 = jnp.zeros((2 * H, 1 + no), jnp.float32)
    w2 = w2.at[:H, :1].set(params["w2c"].astype(jnp.float32))
    w2 = w2.at[H:, 1:].set(params["w2a"].astype(jnp.float32))
    b2 = jnp.concatenate([params["b2c"], params["b2a"]], axis=1).astype(jnp.float32)
    l2 = jnp.concatenate([w2, b2], axis=0)

    return l1, l2, params["log_std"].astype(jnp.float32)


# ----------------------------------------------------------------------------
# Batch-tile selection: big tiles (HBM-bound kernel), avoid padding copies,
# keep >= 2 grid steps for moderate batches (v7x has 2 TensorCores), and stay
# well under scoped VMEM given the 8x lane-padding of narrow (ni~16) rows.
# ----------------------------------------------------------------------------
def _choose_tile(B, block_b):
    cap = max(8, (min(block_b, 8192) // 8) * 8)
    if B <= cap:
        if B >= 2048:
            # Split roughly in half so the second TensorCore (v7x) gets work.
            tb = -(-B // 2)
            return ((tb + 7) // 8) * 8
        return ((B + 7) // 8) * 8          # single tile; pads at most 7 rows
    # Large batch: prefer a tile that divides B (no jnp.pad copy of x),
    # rounded to a multiple of 512 when possible.
    for tb in range((cap // 512) * 512, 511, -512):
        if B % tb == 0:
            return tb
    for tb in range((cap // 8) * 8, 7, -8):
        if B % tb == 0:
            return tb
    return (cap // 8) * 8                  # fallback: will pad


# ----------------------------------------------------------------------------
# Wrapper: batch-gridded pallas_call. Takes pre-packed parameters.
# Returns (mu, std, value) — (mu, std) parameterize the Normal distribution.
# ----------------------------------------------------------------------------
def actor_critic_ppo_forward(x, packed_params, *, block_b=4096):
    l1, l2, log_std = packed_params
    B, ni = x.shape
    no = l2.shape[1] - 1
    H2 = l2.shape[0] - 1

    x = x.astype(l1.dtype)                 # bf16: halves the dominant HBM read

    TB = _choose_tile(B, block_b)
    grid_steps = pl.cdiv(B, TB)
    B_pad = grid_steps * TB
    if B_pad != B:                          # rare fallback; tile choice avoids it
        x = jnp.pad(x, ((0, B_pad - B), (0, 0)))

    # Deeper input pipeline only when per-step work is tiny and the grid is
    # long (small-rollout batches, most useful on v5e). Default double-buffer
    # otherwise.
    x_spec_kwargs = {}
    if TB < 512 and grid_steps >= 4:
        x_spec_kwargs["pipeline_mode"] = pl.Buffered(3)
    x_spec = pl.BlockSpec((TB, ni), lambda i: (i, 0), **x_spec_kwargs)

    out = pl.pallas_call(
        actor_critic_kernel,
        out_shape=jax.ShapeDtypeStruct((B_pad, 1 + no), jnp.float32),
        grid_spec=pltpu.PrefetchScalarGridSpec(
            num_scalar_prefetch=0,
            grid=(grid_steps,),
            in_specs=[
                x_spec,                                              # x tile (streamed)
                pl.BlockSpec((ni + 1, l1.shape[1]), lambda i: (0, 0)),  # layer-1 slab (resident)
                pl.BlockSpec((H2 + 1, 1 + no), lambda i: (0, 0)),    # layer-2 slab (resident)
            ],
            out_specs=pl.BlockSpec((TB, 1 + no), lambda i: (i, 0)),  # [value | mu] slab
        ),
        compiler_params=pltpu.CompilerParams(
            dimension_semantics=("parallel",),  # batch axis is independent work
        ),
    )(x, l1, l2)

    out = out[:B]                           # drop padded garbage rows
    value = out[:, :1]
    mu = out[:, 1:]
    # std = exp(log_std) is batch-independent: tiny elementwise op in the
    # wrapper, no per-row HBM writeback from the kernel.
    std = jnp.broadcast_to(jnp.exp(log_std), mu.shape)
    return mu, std, value


# ----------------------------------------------------------------------------
# Init mirroring the PyTorch init_weights: W ~ N(0, 0.1), b = 0.1,
# log_std = std * ones((1, num_outputs)). Weights stored as (in, out), i.e.
# transposed relative to torch's (out, in), so the kernel computes y = x @ W + b.
# ----------------------------------------------------------------------------
def init_params(key, num_inputs, num_outputs, hidden_size, std=0.0):
    k1, k2, k3, k4 = jax.random.split(key, 4)
    f32 = jnp.float32
    return {
        # critic
        "w1c": 0.1 * jax.random.normal(k1, (num_inputs, hidden_size), f32),
        "b1c": jnp.full((1, hidden_size), 0.1, f32),
        "w2c": 0.1 * jax.random.normal(k2, (hidden_size, 1), f32),
        "b2c": jnp.full((1, 1), 0.1, f32),
        # actor
        "w1a": 0.1 * jax.random.normal(k3, (num_inputs, hidden_size), f32),
        "b1a": jnp.full((1, hidden_size), 0.1, f32),
        "w2a": 0.1 * jax.random.normal(k4, (hidden_size, num_outputs), f32),
        "b2a": jnp.full((1, num_outputs), 0.1, f32),
        # log_std parameter
        "log_std": jnp.full((1, num_outputs), std, f32),
    }


if __name__ == "__main__":
    # Small shapes consistent with the module's forward.
    batch, num_inputs, num_outputs, hidden_size = 8, 16, 4, 32

    key = jax.random.PRNGKey(0)
    key_x, key_p = jax.random.split(key)

    x = jax.random.normal(key_x, (batch, num_inputs), jnp.float32)
    params = init_params(key_p, num_inputs, num_outputs, hidden_size, std=0.0)

    # Packing hoisted out of the forward: done once per parameter update.
    packed = pack_params(params)

    mu, std, value = actor_critic_ppo_forward(x, packed)
    jax.block_until_ready((mu, std, value))

    # Pure-JAX f32 reference check (kernel streams bf16 activations/weights,
    # accumulates in f32 -> loose-ish tolerance).
    hc = jnp.maximum(x @ params["w1c"] + params["b1c"], 0.0)
    value_ref = hc @ params["w2c"] + params["b2c"]
    ha = jnp.maximum(x @ params["w1a"] + params["b1a"], 0.0)
    mu_ref = ha @ params["w2a"] + params["b2a"]
    std_ref = jnp.broadcast_to(jnp.exp(params["log_std"]), mu_ref.shape)

    assert mu.shape == (batch, num_outputs)
    assert std.shape == (batch, num_outputs)
    assert value.shape == (batch, 1)
    assert jnp.allclose(mu, mu_ref, atol=2e-2), float(jnp.abs(mu - mu_ref).max())
    assert jnp.allclose(std, std_ref, atol=1e-6)
    assert jnp.allclose(value, value_ref, atol=2e-2), float(jnp.abs(value - value_ref).max())

    # TODO(synk): torch.distributions.Normal has no Pallas equivalent; the
    # distribution is returned as its (mu, std) parameters.
    print("KERNEL_OK")
</pallas_src>

<mosaic_0001>
module attributes {stable_mosaic.version = 11 : i64} {
  func.func @actor_critic_kernel(%arg0: i32, %arg1: memref<8x16xbf16, #tpu.memory_space<vmem>>, %arg2: memref<17x64xbf16, #tpu.memory_space<vmem>>, %arg3: memref<65x5xf32, #tpu.memory_space<vmem>>, %arg4: memref<8x5xf32, #tpu.memory_space<vmem>>) attributes {dimension_semantics = [#tpu.dimension_semantics<parallel>], iteration_bounds = array<i64: 1>, scalar_prefetch = 0 : i64, scratch_operands = 0 : i64, tpu.core_type = #tpu.core_type<tc>, window_params = [{transform_indices = @transform_0, window_bounds = array<i64: 8, 16>}, {pipeline_mode = #tpu.pipeline_mode<synchronous>, transform_indices = @transform_1, window_bounds = array<i64: 17, 64>}, {pipeline_mode = #tpu.pipeline_mode<synchronous>, transform_indices = @transform_2, window_bounds = array<i64: 65, 5>}, {transform_indices = @transform_3, window_bounds = array<i64: 8, 5>}]} {
    %c0 = arith.constant 0 : index
    %c0_0 = arith.constant 0 : index
    %0 = vector.load %arg1[%c0, %c0_0] : memref<8x16xbf16, #tpu.memory_space<vmem>>, vector<8x16xbf16>
    %c0_1 = arith.constant 0 : index
    %c0_2 = arith.constant 0 : index
    %1 = vector.load %arg2[%c0_1, %c0_2] : memref<17x64xbf16, #tpu.memory_space<vmem>>, vector<16x64xbf16>
    %c16 = arith.constant 16 : index
    %c0_3 = arith.constant 0 : index
    %2 = vector.load %arg2[%c16, %c0_3] : memref<17x64xbf16, #tpu.memory_space<vmem>>, vector<1x64xbf16>
    %3 = arith.extf %2 : vector<1x64xbf16> to vector<1x64xf32>
    %cst = arith.constant dense<0.000000e+00> : vector<8x64xf32>
    %4 = tpu.matmul %0, %1, %cst {dimension_numbers = #tpu.dot_dimension_numbers<[1], [0], [0], [1], [0, 0, 1, 1], [], []>} : vector<8x16xbf16>, vector<16x64xbf16>, vector<8x64xf32> -> vector<8x64xf32>
    %5 = vector.broadcast %3 : vector<1x64xf32> to vector<8x64xf32>
    %6 = arith.addf %4, %5 : vector<8x64xf32>
    %cst_4 = arith.constant 0.000000e+00 : f32
    %7 = vector.broadcast %cst_4 : f32 to vector<8x64xf32>
    %8 = arith.maximumf %6, %7 : vector<8x64xf32>
    %c0_5 = arith.constant 0 : index
    %c0_6 = arith.constant 0 : index
    %9 = vector.load %arg3[%c0_5, %c0_6] : memref<65x5xf32, #tpu.memory_space<vmem>>, vector<64x5xf32>
    %c64 = arith.constant 64 : index
    %c0_7 = arith.constant 0 : index
    %10 = vector.load %arg3[%c64, %c0_7] : memref<65x5xf32, #tpu.memory_space<vmem>>, vector<1x5xf32>
    %cst_8 = arith.constant dense<0.000000e+00> : vector<8x5xf32>
    %11 = tpu.matmul %8, %9, %cst_8 {dimension_numbers = #tpu.dot_dimension_numbers<[1], [0], [0], [1], [0, 0, 1, 1], [], []>} : vector<8x64xf32>, vector<64x5xf32>, vector<8x5xf32> -> vector<8x5xf32>
    %12 = vector.broadcast %10 : vector<1x5xf32> to vector<8x5xf32>
    %13 = arith.addf %11, %12 : vector<8x5xf32>
    %c0_9 = arith.constant 0 : index
    %c0_10 = arith.constant 0 : index
    %14 = vector.load %arg4[%c0_9, %c0_10] : memref<8x5xf32, #tpu.memory_space<vmem>>, vector<8x5xf32>
    tpu.vector_store %arg4[%c0_9, %c0_10], %13 {strides = array<i32>} : memref<8x5xf32, #tpu.memory_space<vmem>>, vector<8x5xf32>,
    return
  }
  func.func @transform_0(%arg0: i32) -> (i32, i32) {
    %c0_i32 = arith.constant 0 : i32
    %c0_i32_0 = arith.constant 0 : i32
    return %arg0, %c0_i32 : i32, i32
  }
  func.func @transform_1(%arg0: i32) -> (i32, i32) {
    %c0_i32 = arith.constant 0 : i32
    %c0_i32_0 = arith.constant 0 : i32
    %c0_i32_1 = arith.constant 0 : i32
    return %c0_i32, %c0_i32_0 : i32, i32
  }
  func.func @transform_2(%arg0: i32) -> (i32, i32) {
    %c0_i32 = arith.constant 0 : i32
    %c0_i32_0 = arith.constant 0 : i32
    %c0_i32_1 = arith.constant 0 : i32
    return %c0_i32, %c0_i32_0 : i32, i32
  }
  func.func @transform_3(%arg0: i32) -> (i32, i32) {
    %c0_i32 = arith.constant 0 : i32
    %c0_i32_0 = arith.constant 0 : i32
    return %arg0, %c0_i32 : i32, i32
  }
}

</mosaic_0001>

<bundles_post_ra>
// kernel: tpu_custom_call.1
= control target key start
LH: loop header
LB: loop body
LE: loop exit
PB: predicated region body
PF: predicated region fallthrough
CT: control target
= control target key end

     0   :  { %v245_v1 = vmov 0.0   ;;  %vm246_vm0 = vmmov 0   ;;  %vm31_vm1 = vcmask 130048   ;;  %s307_s0 = inlined_call_operand.vmem [shape: bf16[8,16], index: 0, kind: input, shape index: {}]   ;;  %s308_s1 = inlined_call_operand.vmem [shape: bf16[17,64], index: 1, kind: input, shape index: {}]   ;;  %s309_s2 = inlined_call_operand.vmem [shape: f32[65,5], index: 2, kind: input, shape index: {}]   ;;  %s310_s3 = inlined_call_operand.hbm [shape: f32[8,5], index: 3, kind: output, shape index: {}]  }
   0x1   :  { %v222_v0 = vld [vmem:[%s308_s1] sm:$0xff]   ;;  %194 = vmatprep.subr.bf16.mxu0 %v245_v1  ;;  %200 = vmatprep.subr.mxu1 %v245_v1  ;;  %v83_v2 = vld [vmem:[%s309_s2 + $0x38] sm:$0xff]  ;;  %v82_v4 = vld [vmem:[%s309_s2 + $0x30] sm:$0xff] }
   0x2   :  { %195 = vmatpush3.bf16.msra.mxu0 %v222_v0  ;;  %196 = vmatprep.mubr.msk.bf16.mxu0 %vm246_vm0, %v245_v1  ;;  %v16_v3 = vld [vmem:[%s307_s0] sm:$0xf] }
   0x3   :  { %201 = vmatpush3.msra.mxu1 %v83_v2  ;;  %216 = vmatprep.mubr.msk.f32.mxu1 %vm246_vm0, %v245_v1 }
   0x4   :  { %8 = vsyncpa [#allocation3], 0  ;;  %202 = vmatprep.subr.mxu1 %v245_v1  ;;  %v81_v5 = vld [vmem:[%s309_s2 + $0x28] sm:$0xff]  ;;  %v80_v6 = vld [vmem:[%s309_s2 + $0x20] sm:$0xff]  ;;  %v21_v11 = vlaneseq  ;;  %vm89_vm2 = vcmask 523264   ;;  %s247_s8 = smov [#allocation2]  }
   0x5   :  { %197 = vmatmul.mubr.msk.bf16.vlgmr.msra.gmra.mxu0 %vm31_vm1, %v16_v3  ;;  %203 = vmatpush3.msra.mxu1 %v82_v4  ;;  %v79_v7 = vld [vmem:[%s309_s2 + $0x18] sm:$0xff]  ;;  %v78_v8 = vld [vmem:[%s309_s2 + $0x10] sm:$0xff]  ;;  %v77_v9 = vld [vmem:[%s309_s2 + $0x8] sm:$0xff]  ;;  %s171_s9 = sshll.u32 %s247_s8, 4  ;;  %vm163_vm3 = vcmask 39936   ;;  %s172_s9 = int_to_ptr.vmem [resolvable:$true] %s171_s9 }
   0x6   :  { %204 = vmatprep.subr.mxu1 %v245_v1  ;;  %v76_v10 = vld [vmem:[%s309_s2] sm:$0xff]  ;;  %v22_v12 = vshrl.u32 %v21_v11, 7  ;;  %v19_v13 = vld [vmem:[%s308_s1 + $0x8] sm:$0x1]  ;;  %s223_s1 = scalar_lea.vmem %s172_s9, 128  ;;  %p228_p1 = scmp.lt.s32.totalorder %s172_s9, %s172_s9 }
   0x7   :  { %205 = vmatpush3.msra.mxu1 %v81_v5  ;;  %v20_v14 = vunpack.c.l.bf16 %v19_v13  ;;  %v181_v23 = vld [vmem:[%s309_s2 + $0x40] ss:$0 sm:$0xff]  ;;  %p224_p0 = scmp.ne.s32.totalorder %s172_s9, %s223_s1  ;;  %p229_p2 = scmp.lt.s32.totalorder %s223_s1, %s223_s1 }
   0x8   :  { %206 = vmatprep.subr.mxu1 %v245_v1  ;;  %v23_v15 = vsub.s32 0, %v22_v12 }
   0x9   :  { %207 = vmatpush3.msra.mxu1 %v80_v6  ;;  %p230_p3 = por %p229_p2, %p228_p1 }
   0xa   :  { %208 = vmatprep.subr.mxu1 %v245_v1  ;;  %v24_v16 = vrot.slane %v20_v14, %v23_v15 }
   0xb   :  { %209 = vmatpush3.msra.mxu1 %v79_v7  ;;  %p231_p4 = pnand %p230_p3, %p224_p0 }
   0xc   :  { %210 = vmatprep.subr.mxu1 %v245_v1 }
   0xd   :  { %211 = vmatpush3.msra.mxu1 %v78_v8 }
   0xe   :  { %212 = vmatprep.subr.mxu1 %v245_v1 }
   0xf   :  { %213 = vmatpush3.msra.mxu1 %v77_v9 }
  0x10   :  { %214 = vmatprep.subr.mxu1 %v245_v1 }
  0x11   :  { %215 = vmatpush3.msra.mxu1 %v76_v10 }
  0xc5   :  { %v69_v17 = vpop.f32.mrf.mxu0 }
  0xc6   :  { %v70_v18 = vadd.f32 %v69_v17, %v24_v16 }
  0xc7   :  { %v198_v19 = vpop.f32.mrf.mxu0 }
  0xc8   :  { %v75_v20 = vmax.f32 %v70_v18, 0.0 }
  0xc9   :  { %v72_v21 = vpop.f32.mrf.mxu0 }
  0xca   :  { %217 = vmatmul.mubr.msk.f32.vlgmr.msra.gmra.mxu1 %vm89_vm2, %v75_v20 }
  0xcb   :  { %v199_v22 = vpop.f32.mrf.mxu0 }
 0x18a   :  { %v159_v24 = vpop.f32.mrf.mxu1 }
 0x18b   :  { %v160_v25 = vadd.f32 %v181_v23, %v159_v24 }
 0x18c   :  { %v218_v26 = vpop.f32.mrf.mxu1 }
 0x18d   :  { %164 = vst.msk [vmem:[#allocation2] sm:$0xff] %vm163_vm3, %v160_v25 }
 0x18e   :  { %234 = shalt.err (!%p231_p4)
}
 0x18f   :  { %174 = dma.vmem_to_hbm [thread:$0]  %s172_s9, 128, %s310_s3, [#allocation3]  }
 0x190   :  { %243 = dma.done.wait [#allocation3], 128  }
 0x191   :  { %244 = vsyncadd [#allocation3], 4294967168 }
 0x192   :  { %178 = vsyncpa [#allocation3], 1 }

</bundles_post_ra>
